<compile_context>
chip_gen: v6e
topology: v6e:2x2x1
jax: 0.10.0
libtpu: 0.0.40
codegen_flags: <defaults>
</compile_context>

<pallas_src>
import functools

import jax
import jax.numpy as jnp
from jax.experimental import pallas as pl
from jax.experimental.pallas import tpu as pltpu

_LANES = 128
_VMEM_LIMIT = 32 * 1024 * 1024  # <= physical VMEM on v5e/v6e (128 MiB) and v7x (64 MiB)


def _device_params():
    """(num_cores, max_row_tile) tuned per TPU generation; conservative fallback."""
    kind = ""
    try:
        kind = jax.devices()[0].device_kind.lower()
    except Exception:
        pass
    if "v7" in kind:
        return 2, 8192          # 2 TC/chip; 16 MiB double-buffered inputs fits 64 MiB VMEM
    if "v6" in kind:
        return 1, 8192          # 1 TC; 128 MiB physical VMEM
    return 1, 4096              # v5e / unknown: 8 MiB double-buffered inputs


def _sublane_multiple(dtype):
    """Minimum sublane tiling for packed dtypes: 8 (32-bit), 16 (16-bit), 32 (8-bit)."""
    itemsize = max(1, jnp.dtype(dtype).itemsize)
    return 8 * max(1, 4 // itemsize)


def _bce_kernel(p_ref, y_ref, out_ref, *, rows, block_rows, chunks_per_core):
    c = pl.program_id(0)   # core / range split (parallel)
    i = pl.program_id(1)   # reduction axis (chunks within this core's range)
    blk = c * chunks_per_core + i   # logical block index

    @pl.when(i == 0)
    def _():
        out_ref[...] = jnp.zeros_like(out_ref)

    # In-kernel upcast: inputs may be bf16 etc.; cast on the tile (VPU) instead of
    # materializing f32 copies in HBM.
    p = p_ref[...].astype(jnp.float32)
    y = y_ref[...].astype(jnp.float32)

    # PyTorch BCELoss clamps log terms at -100 so y * clamped_log is finite even for
    # p==0 / p==1.  Reassociated form saves 2 VALU ops per element.
    log_p = jnp.maximum(jnp.log(p), -100.0)
    log_1mp = jnp.maximum(jnp.log(1.0 - p), -100.0)
    loss = -(log_1mp + y * (log_p - log_1mp))

    # Interior (full) blocks: accumulate unmasked — no iota / select in the hot path.
    @pl.when((blk + 1) * block_rows <= rows)
    def _():
        out_ref[...] += loss.reshape(block_rows // 8, 8, _LANES).sum(axis=0)

    # Ragged edge block (and any duplicated out-of-range block from the core split):
    # select-based masking on a row iota vs. a scalar valid-row count.  Select (not
    # multiply-by-mask) so NaNs from log(garbage rows) are discarded.
    @pl.when((blk + 1) * block_rows > rows)
    def _():
        valid_rows = rows - blk * block_rows   # <= 0 for fully duplicated blocks
        row = jax.lax.broadcasted_iota(jnp.int32, (block_rows, _LANES), 0)
        masked = jnp.where(row < valid_rows, loss, 0.0)
        out_ref[...] += masked.reshape(block_rows // 8, 8, _LANES).sum(axis=0)


def _bce_tail_sum(p_tail, y_tail):
    """Plain-JAX loss sum for the <=127-element lane tail (avoids a full-array pad)."""
    pt = p_tail.astype(jnp.float32)
    yt = y_tail.astype(jnp.float32)
    log_p = jnp.maximum(jnp.log(pt), -100.0)
    log_1mp = jnp.maximum(jnp.log(1.0 - pt), -100.0)
    return jnp.sum(-(log_1mp + yt * (log_p - log_1mp)))


def quantum_loss_function(predictions, targets):
    """Equivalent of BCELoss(reduction='mean')(predictions.float(), targets.float())."""
    p = predictions.reshape(-1)
    y = targets.reshape(-1)
    n = int(p.shape[0])
    if n == 0:
        # PyTorch BCELoss(mean) on empty input yields NaN (0/0).
        return jnp.float32(jnp.nan)

    num_cores, max_row_tile = _device_params()

    rem = n % _LANES
    n_main = n - rem
    rows = n_main // _LANES

    total = jnp.float32(0.0)

    if rows > 0:
        # Zero-copy reshape of the 128-aligned prefix to a lane-dense slab.
        p2 = p[:n_main].reshape(rows, _LANES)
        y2 = y[:n_main].reshape(rows, _LANES)

        # Block rows: as large as possible (amortize the ~0.35 us per-step overhead),
        # rounded to the packed-dtype sublane multiple of both inputs.
        sub = max(_sublane_multiple(p2.dtype), _sublane_multiple(y2.dtype))
        block_rows = min(max_row_tile, ((rows + sub - 1) // sub) * sub)
        g = pl.cdiv(rows, block_rows)                 # number of real row-blocks
        chunks_per_core = pl.cdiv(g, num_cores)

        kernel = functools.partial(
            _bce_kernel, rows=rows, block_rows=block_rows,
            chunks_per_core=chunks_per_core,
        )

        def in_map(c, i):
            # Clamp so we never issue an out-of-bounds block DMA; duplicated blocks
            # are fully masked in the kernel via the logical block index.
            return (jnp.minimum(c * chunks_per_core + i, g - 1), 0)

        bytes_accessed = int(p2.size) * jnp.dtype(p2.dtype).itemsize \
            + int(y2.size) * jnp.dtype(y2.dtype).itemsize

        partials = pl.pallas_call(
            kernel,
            out_shape=jax.ShapeDtypeStruct((num_cores, 8, _LANES), jnp.float32),
            grid_spec=pltpu.PrefetchScalarGridSpec(
                num_scalar_prefetch=0,
                grid=(num_cores, chunks_per_core),
                in_specs=[
                    pl.BlockSpec((block_rows, _LANES), in_map),
                    pl.BlockSpec((block_rows, _LANES), in_map),
                ],
                out_specs=pl.BlockSpec((None, 8, _LANES), lambda c, i: (c, 0, 0)),
            ),
            compiler_params=pltpu.CompilerParams(
                dimension_semantics=("parallel", "arbitrary"),
                vmem_limit_bytes=_VMEM_LIMIT,
            ),
            cost_estimate=pl.CostEstimate(
                flops=10 * n_main,
                transcendentals=2 * n_main,
                bytes_accessed=bytes_accessed,
            ),
        )(p2, y2)

        total = total + jnp.sum(partials)

    if rem:
        # <=127-element lane tail: tiny, compute in plain JAX (no padded HBM copy).
        total = total + _bce_tail_sum(p[n_main:], y[n_main:])

    return total / jnp.float32(n)


class QuantumLossFunction:
    def __call__(self, predictions, targets):
        return quantum_loss_function(predictions, targets)


def _reference_bce(predictions, targets):
    p = predictions.astype(jnp.float32)
    y = targets.astype(jnp.float32)
    log_p = jnp.maximum(jnp.log(p), -100.0)
    log_1mp = jnp.maximum(jnp.log(1.0 - p), -100.0)
    return jnp.mean(-(y * log_p + (1.0 - y) * log_1mp))


if __name__ == "__main__":
    key = jax.random.PRNGKey(0)
    kp, kt = jax.random.split(key)
    # predictions must be probabilities in (0, 1); targets in [0, 1]
    x_shape = (2, 4, 16, 16)
    predictions = jax.nn.sigmoid(jax.random.normal(kp, x_shape, jnp.float32))
    targets = (jax.random.uniform(kt, x_shape) > 0.5).astype(jnp.float32)

    loss_fn = QuantumLossFunction()
    loss = jax.block_until_ready(loss_fn(predictions, targets))

    ref = jax.block_until_ready(_reference_bce(predictions, targets))
    assert jnp.allclose(loss, ref, atol=1e-5, rtol=1e-5), (loss, ref)
    print("KERNEL_OK")
</pallas_src>

<mosaic_0001>
module attributes {stable_mosaic.version = 11 : i64} {
  func.func @_bce_kernel(%arg0: i32, %arg1: i32, %arg2: memref<16x128xf32, #tpu.memory_space<vmem>>, %arg3: memref<16x128xf32, #tpu.memory_space<vmem>>, %arg4: memref<1x8x128xf32, #tpu.memory_space<vmem>>) attributes {dimension_semantics = [#tpu.dimension_semantics<parallel>, #tpu.dimension_semantics<arbitrary>], iteration_bounds = array<i64: 1, 1>, scalar_prefetch = 0 : i64, scratch_operands = 0 : i64, tpu.core_type = #tpu.core_type<tc>, window_params = [{transform_indices = @transform_0, window_bounds = array<i64: 16, 128>}, {transform_indices = @transform_1, window_bounds = array<i64: 16, 128>}, {transform_indices = @transform_2, window_bounds = array<i64: 1, 8, 128>}]} {
    %c1_i32 = arith.constant 1 : i32
    %0 = arith.muli %arg0, %c1_i32 : i32
    %1 = arith.addi %0, %arg1 : i32
    %c0_i32 = arith.constant 0 : i32
    %2 = arith.cmpi eq, %arg1, %c0_i32 : i32
    %3 = arith.extui %2 : i1 to i32
    %c0_i32_0 = arith.constant 0 : i32
    %4 = arith.cmpi ne, %3, %c0_i32_0 : i32
    scf.if %4 {
      %cst_14 = arith.constant 0.000000e+00 : f32
      %30 = vector.broadcast %cst_14 : f32 to vector<8x128xf32>
      %c0_15 = arith.constant 0 : index
      %c0_16 = arith.constant 0 : index
      %c0_17 = arith.constant 0 : index
      %31 = vector.load %arg4[%c0_15, %c0_16, %c0_17] : memref<1x8x128xf32, #tpu.memory_space<vmem>>, vector<1x8x128xf32>
      %32 = vector.shape_cast %31 : vector<1x8x128xf32> to vector<8x128xf32>
      %33 = vector.shape_cast %30 : vector<8x128xf32> to vector<1x8x128xf32>
      tpu.vector_store %arg4[%c0_15, %c0_16, %c0_17], %33 {strides = array<i32>} : memref<1x8x128xf32, #tpu.memory_space<vmem>>, vector<1x8x128xf32>,
    } else {
    }
    %c0 = arith.constant 0 : index
    %c0_1 = arith.constant 0 : index
    %5 = vector.load %arg2[%c0, %c0_1] : memref<16x128xf32, #tpu.memory_space<vmem>>, vector<16x128xf32>
    %c0_2 = arith.constant 0 : index
    %c0_3 = arith.constant 0 : index
    %6 = vector.load %arg3[%c0_2, %c0_3] : memref<16x128xf32, #tpu.memory_space<vmem>>, vector<16x128xf32>
    %7 = math.log %5 : vector<16x128xf32>
    %cst = arith.constant -1.000000e+02 : f32
    %8 = vector.broadcast %cst : f32 to vector<16x128xf32>
    %9 = arith.maximumf %7, %8 : vector<16x128xf32>
    %cst_4 = arith.constant 1.000000e+00 : f32
    %10 = vector.broadcast %cst_4 : f32 to vector<16x128xf32>
    %11 = arith.subf %10, %5 : vector<16x128xf32>
    %12 = math.log %11 : vector<16x128xf32>
    %cst_5 = arith.constant -1.000000e+02 : f32
    %13 = vector.broadcast %cst_5 : f32 to vector<16x128xf32>
    %14 = arith.maximumf %12, %13 : vector<16x128xf32>
    %15 = arith.subf %9, %14 : vector<16x128xf32>
    %16 = arith.mulf %6, %15 : vector<16x128xf32>
    %17 = arith.addf %14, %16 : vector<16x128xf32>
    %cst_6 = arith.constant 0.000000e+00 : f32
    %18 = vector.broadcast %cst_6 : f32 to vector<16x128xf32>
    %19 = arith.subf %18, %17 : vector<16x128xf32>
    %c1_i32_7 = arith.constant 1 : i32
    %20 = arith.addi %1, %c1_i32_7 : i32
    %c16_i32 = arith.constant 16 : i32
    %21 = arith.muli %20, %c16_i32 : i32
    %c16_i32_8 = arith.constant 16 : i32
    %22 = arith.cmpi sle, %21, %c16_i32_8 : i32
    %23 = arith.extui %22 : i1 to i32
    %c0_i32_9 = arith.constant 0 : i32
    %24 = arith.cmpi ne, %23, %c0_i32_9 : i32
    scf.if %24 {
      %c0_14 = arith.constant 0 : index
      %c0_15 = arith.constant 0 : index
      %c0_16 = arith.constant 0 : index
      %30 = vector.load %arg4[%c0_14, %c0_15, %c0_16] : memref<1x8x128xf32, #tpu.memory_space<vmem>>, vector<1x8x128xf32>
      %31 = vector.shape_cast %30 : vector<1x8x128xf32> to vector<8x128xf32>
      %32 = vector.shape_cast %19 : vector<16x128xf32> to vector<2x8x128xf32>
      %cst_17 = arith.constant dense<0.000000e+00> : vector<8x128xf32>
      %33 = vector.multi_reduction <add>, %32, %cst_17 [0] : vector<2x8x128xf32> to vector<8x128xf32>
      %34 = arith.addf %31, %33 : vector<8x128xf32>
      %c0_18 = arith.constant 0 : index
      %c0_19 = arith.constant 0 : index
      %c0_20 = arith.constant 0 : index
      %35 = vector.load %arg4[%c0_18, %c0_19, %c0_20] : memref<1x8x128xf32, #tpu.memory_space<vmem>>, vector<1x8x128xf32>
      %36 = vector.shape_cast %35 : vector<1x8x128xf32> to vector<8x128xf32>
      %37 = vector.shape_cast %34 : vector<8x128xf32> to vector<1x8x128xf32>
      tpu.vector_store %arg4[%c0_18, %c0_19, %c0_20], %37 {strides = array<i32>} : memref<1x8x128xf32, #tpu.memory_space<vmem>>, vector<1x8x128xf32>,
    } else {
    }
    %c1_i32_10 = arith.constant 1 : i32
    %25 = arith.addi %1, %c1_i32_10 : i32
    %c16_i32_11 = arith.constant 16 : i32
    %26 = arith.muli %25, %c16_i32_11 : i32
    %c16_i32_12 = arith.constant 16 : i32
    %27 = arith.cmpi sgt, %26, %c16_i32_12 : i32
    %28 = arith.extui %27 : i1 to i32
    %c0_i32_13 = arith.constant 0 : i32
    %29 = arith.cmpi ne, %28, %c0_i32_13 : i32
    scf.if %29 {
      %c16_i32_14 = arith.constant 16 : i32
      %30 = arith.muli %1, %c16_i32_14 : i32
      %c16_i32_15 = arith.constant 16 : i32
      %31 = arith.subi %c16_i32_15, %30 : i32
      %32 = tpu.iota {dimensions = array<i32: 0>} : vector<16x128xi32>
      %33 = vector.broadcast %31 : i32 to vector<16x128xi32>
      %34 = arith.cmpi slt, %32, %33 : vector<16x128xi32>
      %cst_16 = arith.constant 0.000000e+00 : f32
      %35 = vector.broadcast %cst_16 : f32 to vector<16x128xf32>
      %36 = arith.select %34, %19, %35 : vector<16x128xi1>, vector<16x128xf32>
      %c0_17 = arith.constant 0 : index
      %c0_18 = arith.constant 0 : index
      %c0_19 = arith.constant 0 : index
      %37 = vector.load %arg4[%c0_17, %c0_18, %c0_19] : memref<1x8x128xf32, #tpu.memory_space<vmem>>, vector<1x8x128xf32>
      %38 = vector.shape_cast %37 : vector<1x8x128xf32> to vector<8x128xf32>
      %39 = vector.shape_cast %36 : vector<16x128xf32> to vector<2x8x128xf32>
      %cst_20 = arith.constant dense<0.000000e+00> : vector<8x128xf32>
      %40 = vector.multi_reduction <add>, %39, %cst_20 [0] : vector<2x8x128xf32> to vector<8x128xf32>
      %41 = arith.addf %38, %40 : vector<8x128xf32>
      %c0_21 = arith.constant 0 : index
      %c0_22 = arith.constant 0 : index
      %c0_23 = arith.constant 0 : index
      %42 = vector.load %arg4[%c0_21, %c0_22, %c0_23] : memref<1x8x128xf32, #tpu.memory_space<vmem>>, vector<1x8x128xf32>
      %43 = vector.shape_cast %42 : vector<1x8x128xf32> to vector<8x128xf32>
      %44 = vector.shape_cast %41 : vector<8x128xf32> to vector<1x8x128xf32>
      tpu.vector_store %arg4[%c0_21, %c0_22, %c0_23], %44 {strides = array<i32>} : memref<1x8x128xf32, #tpu.memory_space<vmem>>, vector<1x8x128xf32>,
    } else {
    }
    return
  }
  func.func @transform_0(%arg0: i32, %arg1: i32) -> (i32, i32) {
    %c1_i32 = arith.constant 1 : i32
    %0 = arith.muli %arg0, %c1_i32 : i32
    %1 = arith.addi %0, %arg1 : i32
    %c0_i32 = arith.constant 0 : i32
    %2 = arith.minsi %1, %c0_i32 : i32
    %c0_i32_0 = arith.constant 0 : i32
    %c0_i32_1 = arith.constant 0 : i32
    return %2, %c0_i32_0 : i32, i32
  }
  func.func @transform_1(%arg0: i32, %arg1: i32) -> (i32, i32) {
    %c1_i32 = arith.constant 1 : i32
    %0 = arith.muli %arg0, %c1_i32 : i32
    %1 = arith.addi %0, %arg1 : i32
    %c0_i32 = arith.constant 0 : i32
    %2 = arith.minsi %1, %c0_i32 : i32
    %c0_i32_0 = arith.constant 0 : i32
    %c0_i32_1 = arith.constant 0 : i32
    return %2, %c0_i32_0 : i32, i32
  }
  func.func @transform_2(%arg0: i32, %arg1: i32) -> (i32, i32, i32) {
    %c0_i32 = arith.constant 0 : i32
    %c0_i32_0 = arith.constant 0 : i32
    %c0_i32_1 = arith.constant 0 : i32
    return %arg0, %c0_i32, %c0_i32_0 : i32, i32, i32
  }
}

</mosaic_0001>

<bundles_post_ra>
// kernel: tpu_custom_call.1
= control target key start
LH: loop header
LB: loop body
LE: loop exit
PB: predicated region body
PF: predicated region fallthrough
CT: control target
= control target key end

     0   :  { %7 = vsyncpa [#allocation3], 0  ;;  %s249_s0 = inlined_call_operand.hbm [shape: f32[16,128], index: 0, kind: input, shape index: {}]   ;;  %s250_s1 = inlined_call_operand.hbm [shape: f32[16,128], index: 1, kind: input, shape index: {}]   ;;  %s251_s2 = inlined_call_operand.hbm [shape: f32[1,8,128], index: 2, kind: output, shape index: {}]  }
   0x1   :  { %8 = vsyncpa [#allocation6], 0 }
   0x2   :  { %9 = vsyncpa [#allocation4], 0  ;;  %s220_s9 = smov [#allocation2]  }
   0x3   :  { %s21_s10 = sshll.u32 %s220_s9, 4  ;;  %s22_s10 = int_to_ptr.vmem [resolvable:$true] %s21_s10 }
   0x4   :  { %s162_s11 = scalar_lea.vmem %s22_s10, 256  ;;  %p167_p1 = scmp.lt.s32.totalorder %s22_s10, %s22_s10 }
   0x5   :  { %p163_p0 = scmp.ne.s32.totalorder %s22_s10, %s162_s11  ;;  %p168_p2 = scmp.lt.s32.totalorder %s162_s11, %s162_s11 }
   0x7   :  { %p169_p3 = por %p168_p2, %p167_p1 }
   0x9   :  { %p170_p4 = pnand %p169_p3, %p163_p0 }
   0xb   :  { %173 = shalt.err (!%p170_p4)
}
   0xc   :  { %s221_s12 = smov 128   ;;  %s222_s13 = smov 8  }
   0xd   :  { %27 = dma.hbm_to_vmem [thread:$0]  %s249_s0, 256, %s22_s10, [#allocation3], %s221_s12, %s221_s12, %s222_s13  }
   0xe   :  { %s223_s16 = smov [#allocation5]  }
   0xf   :  { %s39_s17 = sshll.u32 %s223_s16, 4  ;;  %s40_s17 = int_to_ptr.vmem [resolvable:$true] %s39_s17 }
  0x10   :  { %s182_s18 = scalar_lea.vmem %s40_s17, 256  ;;  %p187_p6 = scmp.lt.s32.totalorder %s40_s17, %s40_s17 }
  0x11   :  { %p183_p5 = scmp.ne.s32.totalorder %s40_s17, %s182_s18  ;;  %p188_p7 = scmp.lt.s32.totalorder %s182_s18, %s182_s18 }
  0x13   :  { %p189_p8 = por %p188_p7, %p187_p6 }
  0x15   :  { %p190_p9 = pnand %p189_p8, %p183_p5 }
  0x17   :  { %193 = shalt.err (!%p190_p9)
}
  0x18   :  { %45 = dma.hbm_to_vmem [thread:$0]  %s250_s1, 256, %s40_s17, [#allocation6], %s221_s12, %s221_s12, %s222_s13  }
  0x19   :  { %214 = dma.done.wait [#allocation3], 256  }
  0x1a   :  { %215 = vsyncadd [#allocation3], 4294967040 }
  0x1b   :  { %216 = dma.done.wait [#allocation6], 256  }
  0x1c   :  { %217 = vsyncadd [#allocation6], 4294967040  ;;  %v66_v0 = vld [vmem:[#allocation2] sm:$0xff]  ;;  %v67_v1 = vld [vmem:[#allocation2 + $0x8] sm:$0xff]  ;;  %s224_s0 = smov [#allocation7]  }
  0x1d   :  { %146 = vlog2.f32 %v66_v0  ;;  %v76_v2 = vsub.f32 1.0, %v66_v0  ;;  %v77_v3 = vsub.f32 1.0, %v67_v1  ;;  %v68_v15 = vld [vmem:[#allocation5] sm:$0xff]  ;;  %v69_v17 = vld [vmem:[#allocation5 + $0x8] sm:$0xff]  ;;  %s126_s1 = sshll.u32 %s224_s0, 4  ;;  %s127_s1 = int_to_ptr.vmem [resolvable:$true] %s126_s1 }
  0x1e   :  { %148 = vlog2.f32 %v67_v1  ;;  %s194_s21 = scalar_lea.vmem %s127_s1, 128  ;;  %p199_p11 = scmp.lt.s32.totalorder %s127_s1, %s127_s1 }
  0x1f   :  { %150 = vlog2.f32 %v76_v2  ;;  %p195_p10 = scmp.ne.s32.totalorder %s127_s1, %s194_s21  ;;  %p200_p12 = scmp.lt.s32.totalorder %s194_s21, %s194_s21 }
  0x20   :  { %152 = vlog2.f32 %v77_v3 }
  0x21   :  { %p201_p13 = por %p200_p12, %p199_p11 }
  0x23   :  { %p202_p0 = pnand %p201_p13, %p195_p10 }
  0x2a   :  { %v147_v4 = vpop.eup %146 }
  0x2b   :  { %v149_v5 = vpop.eup %148  ;;  %v71_v6 = vmul.f32 0.6931472, %v147_v4 }
  0x2c   :  { %v151_v7 = vpop.eup %150  ;;  %v73_v8 = vmul.f32 0.6931472, %v149_v5 }
  0x2d   :  { %v153_v9 = vpop.eup %152  ;;  %v74_v10 = vmax.f32 %v71_v6, -100.0  ;;  %v79_v11 = vmul.f32 0.6931472, %v151_v7 }
  0x2e   :  { %v75_v12 = vmax.f32 %v73_v8, -100.0  ;;  %v81_v13 = vmul.f32 0.6931472, %v153_v9 }
  0x2f   :  { %v82_v14 = vmax.f32 %v79_v11, -100.0 }
  0x30   :  { %v83_v16 = vmax.f32 %v81_v13, -100.0 }
  0x31   :  { %v84_v18 = vsub.f32 %v74_v10, %v82_v14 }
  0x32   :  { %v85_v19 = vsub.f32 %v75_v12, %v83_v16 }
  0x33   :  { %v86_v20 = vmul.f32 %v84_v18, %v68_v15 }
  0x34   :  { %v87_v21 = vmul.f32 %v85_v19, %v69_v17 }
  0x35   :  { %v88_v22 = vadd.f32 %v86_v20, %v82_v14 }
  0x36   :  { %v89_v23 = vadd.f32 %v87_v21, %v83_v16 }
  0x37   :  { %v90_v24 = vsub.f32 0.0, %v88_v22 }
  0x38   :  { %v91_v25 = vsub.f32 0.0, %v89_v23 }
  0x3a   :  { %v99_v26 = vadd.f32 %v91_v25, %v90_v24 }
  0x3c   :  { %101 = vst [vmem:[#allocation7] sm:$0xff] %v99_v26 }
  0x3d   :  { %205 = shalt.err (!%p202_p0)
}
  0x3e   :  { %129 = dma.vmem_to_hbm [thread:$0]  %s127_s1, 128, %s251_s2, [#allocation4]  }
  0x3f   :  { %218 = dma.done.wait [#allocation4], 128  }
  0x40   :  { %219 = vsyncadd [#allocation4], 4294967168 }
  0x41   :  { %133 = vsyncpa [#allocation3], 1 }
  0x42   :  { %134 = vsyncpa [#allocation6], 1 }
  0x43   :  { %135 = vsyncpa [#allocation4], 1 }

</bundles_post_ra>
